<compile_context>
chip_gen: v5e
topology: v5e:2x2
jax: 0.10.0
libtpu: 0.0.40
codegen_flags: <defaults>
</compile_context>

<pallas_src>
import functools

import jax
import jax.numpy as jnp
from jax.experimental import pallas as pl
from jax.experimental.pallas import tpu as pltpu


def _round_up(n, m):
    return ((n + m - 1) // m) * m


def mlp_kernel(x_ref, w1_ref, w2_ref, w3_ref, b_ref, o_ref, *, h1, h2, out_dim,
               compute_dtype):
    # One batch tile per grid step: 3 MXU matmuls (bf16 in, f32 acc) + VPU relu/bias.
    x = x_ref[...].astype(compute_dtype)          # in-kernel f32 -> bf16 cast (VPU)
    # Bias slab packed as rows of a single (3, 32) f32 tile (one DMA instead of 3).
    b1 = b_ref[0:1, :h1]                          # (1, H1)
    b2 = b_ref[1:2, :h2]                          # (1, H2)
    b3 = b_ref[2:3, :out_dim]                     # (1, O)

    a1 = jnp.dot(x, w1_ref[...], preferred_element_type=jnp.float32) + b1
    a1 = jnp.maximum(a1, 0.0).astype(compute_dtype)
    a2 = jnp.dot(a1, w2_ref[...], preferred_element_type=jnp.float32) + b2
    a2 = jnp.maximum(a2, 0.0).astype(compute_dtype)
    # Narrow (TM, 3) f32 store: masked vst, but ~40x fewer writeback bytes than
    # a 128-lane padded slab -- dominant win in this memory-bound regime.
    y = jnp.dot(a2, w3_ref[...], preferred_element_type=jnp.float32) + b3
    o_ref[...] = y.astype(o_ref.dtype)


def drone_dnn_forward(x, params, *, block_batch=2048, compute_dtype=jnp.bfloat16):
    """x: [B, F] float32; params: w1,b1,w2,b2,w3,b3 with weights as [in, out]."""
    w1, b1 = params["w1"], params["b1"]
    w2, b2 = params["w2"], params["b2"]
    w3, b3 = params["w3"], params["b3"]

    B, F = x.shape
    H1 = w1.shape[1]
    H2 = w2.shape[1]
    O = w3.shape[1]
    BW = max(H1, H2, O)  # bias-slab width

    # Batch tile: multiple of 8 (sublane constraint), at most the requested
    # block_batch, and capped so the grid has >= 2 tiles when B allows it so the
    # "parallel" batch axis can feed both v7x TensorCores.
    tm_req = _round_up(max(block_batch, 8), 8)
    tm_half = _round_up(pl.cdiv(B, 2), 8)
    TM = max(8, min(tm_req, tm_half))
    grid = (pl.cdiv(B, TM),)  # ragged last tile handled by Pallas (masked writes)

    # ---- host-side weight prep (tiny; once per call) ------------------------
    w1_c = w1.astype(compute_dtype)
    w2_c = w2.astype(compute_dtype)
    w3_c = w3.astype(compute_dtype)
    bias = jnp.zeros((3, BW), jnp.float32)
    bias = bias.at[0, :H1].set(b1.reshape(-1))
    bias = bias.at[1, :H2].set(b2.reshape(-1))
    bias = bias.at[2, :O].set(b3.reshape(-1))

    # Weights/bias: same block every grid step -> stay VMEM-resident across batch tiles.
    resident = lambda shape: pl.BlockSpec(shape, lambda i: (0, 0))

    # TODO(synk): if xprof on v5e still shows exposed writeback DMA, sweep
    # pipeline_mode=pl.Buffered(3) on the x in_spec / out_spec.
    out = pl.pallas_call(
        functools.partial(mlp_kernel, h1=H1, h2=H2, out_dim=O,
                          compute_dtype=compute_dtype),
        out_shape=jax.ShapeDtypeStruct((B, O), jnp.float32),
        grid=grid,
        in_specs=[
            pl.BlockSpec((TM, F), lambda i: (i, 0)),   # f32 activation tile over batch
            resident((F, H1)),
            resident((H1, H2)),
            resident((H2, O)),
            resident((3, BW)),
        ],
        out_specs=pl.BlockSpec((TM, O), lambda i: (i, 0)),   # true narrow output
        compiler_params=pltpu.CompilerParams(
            dimension_semantics=("parallel",),   # batch tiles are independent
        ),
    )(x, w1_c, w2_c, w3_c, bias)

    return out


def init_params(key, in_features, h1=32, h2=32, out=3):
    """Deterministic synthetic init (PyTorch Linear shapes, stored as [in, out])."""
    k1, k2, k3, k4, k5, k6 = jax.random.split(key, 6)
    scale = 0.1
    return {
        "w1": scale * jax.random.normal(k1, (in_features, h1), jnp.float32),
        "b1": scale * jax.random.normal(k2, (1, h1), jnp.float32),
        "w2": scale * jax.random.normal(k3, (h1, h2), jnp.float32),
        "b2": scale * jax.random.normal(k4, (1, h2), jnp.float32),
        "w3": scale * jax.random.normal(k5, (h2, out), jnp.float32),
        "b3": scale * jax.random.normal(k6, (1, out), jnp.float32),
    }


def reference_forward(x, p):
    h1 = jnp.maximum(x @ p["w1"] + p["b1"], 0.0)
    h2 = jnp.maximum(h1 @ p["w2"] + p["b2"], 0.0)
    return h2 @ p["w3"] + p["b3"]


if __name__ == "__main__":
    key = jax.random.PRNGKey(0)
    kx, kx2, kp = jax.random.split(key, 3)

    batch, features = 8, 16  # matches the original X.shape[1]=16 MLP spec
    params = init_params(kp, features)

    # Small batch (single grid step).
    x = jax.random.normal(kx, (batch, features), jnp.float32)
    out = jax.block_until_ready(drone_dnn_forward(x, params))
    ref = reference_forward(x, params)
    assert out.shape == (batch, 3)
    # bf16 MXU inputs + f32 accumulation -> loosened tolerance vs. the f32 reference.
    assert jnp.allclose(out, ref, atol=2e-2, rtol=2e-2)

    # Ragged batch that exercises batch tiling + masked last tile (grid of 4 steps).
    x2 = jax.random.normal(kx2, (200, features), jnp.float32)
    out2 = jax.block_until_ready(drone_dnn_forward(x2, params, block_batch=64))
    ref2 = reference_forward(x2, params)
    assert out2.shape == (200, 3)
    assert jnp.allclose(out2, ref2, atol=2e-2, rtol=2e-2)

    print("KERNEL_OK")
</pallas_src>

<mosaic_0001>
module attributes {stable_mosaic.version = 11 : i64} {
  func.func @mlp_kernel(%arg0: i32, %arg1: memref<8x16xf32, #tpu.memory_space<vmem>>, %arg2: memref<16x32xbf16, #tpu.memory_space<vmem>>, %arg3: memref<32x32xbf16, #tpu.memory_space<vmem>>, %arg4: memref<32x3xbf16, #tpu.memory_space<vmem>>, %arg5: memref<3x32xf32, #tpu.memory_space<vmem>>, %arg6: memref<8x3xf32, #tpu.memory_space<vmem>>) attributes {dimension_semantics = [#tpu.dimension_semantics<parallel>], iteration_bounds = array<i64: 1>, scalar_prefetch = 0 : i64, scratch_operands = 0 : i64, tpu.core_type = #tpu.core_type<tc>, window_params = [{transform_indices = @transform_0, window_bounds = array<i64: 8, 16>}, {pipeline_mode = #tpu.pipeline_mode<synchronous>, transform_indices = @transform_1, window_bounds = array<i64: 16, 32>}, {pipeline_mode = #tpu.pipeline_mode<synchronous>, transform_indices = @transform_2, window_bounds = array<i64: 32, 32>}, {pipeline_mode = #tpu.pipeline_mode<synchronous>, transform_indices = @transform_3, window_bounds = array<i64: 32, 3>}, {pipeline_mode = #tpu.pipeline_mode<synchronous>, transform_indices = @transform_4, window_bounds = array<i64: 3, 32>}, {transform_indices = @transform_5, window_bounds = array<i64: 8, 3>}]} {
    %c0 = arith.constant 0 : index
    %c0_0 = arith.constant 0 : index
    %0 = vector.load %arg1[%c0, %c0_0] : memref<8x16xf32, #tpu.memory_space<vmem>>, vector<8x16xf32>
    %1 = arith.truncf %0 : vector<8x16xf32> to vector<8x16xbf16>
    %c0_1 = arith.constant 0 : index
    %c0_2 = arith.constant 0 : index
    %2 = vector.load %arg5[%c0_1, %c0_2] : memref<3x32xf32, #tpu.memory_space<vmem>>, vector<1x32xf32>
    %c1 = arith.constant 1 : index
    %c0_3 = arith.constant 0 : index
    %3 = vector.load %arg5[%c1, %c0_3] : memref<3x32xf32, #tpu.memory_space<vmem>>, vector<1x32xf32>
    %c2 = arith.constant 2 : index
    %c0_4 = arith.constant 0 : index
    %4 = vector.load %arg5[%c2, %c0_4] : memref<3x32xf32, #tpu.memory_space<vmem>>, vector<1x3xf32>
    %c0_5 = arith.constant 0 : index
    %c0_6 = arith.constant 0 : index
    %5 = vector.load %arg2[%c0_5, %c0_6] : memref<16x32xbf16, #tpu.memory_space<vmem>>, vector<16x32xbf16>
    %cst = arith.constant dense<0.000000e+00> : vector<8x32xf32>
    %6 = tpu.matmul %1, %5, %cst {dimension_numbers = #tpu.dot_dimension_numbers<[1], [0], [0], [1], [0, 0, 1, 1], [], []>} : vector<8x16xbf16>, vector<16x32xbf16>, vector<8x32xf32> -> vector<8x32xf32>
    %7 = vector.broadcast %2 : vector<1x32xf32> to vector<8x32xf32>
    %8 = arith.addf %6, %7 : vector<8x32xf32>
    %cst_7 = arith.constant 0.000000e+00 : f32
    %9 = vector.broadcast %cst_7 : f32 to vector<8x32xf32>
    %10 = arith.maximumf %8, %9 : vector<8x32xf32>
    %11 = arith.truncf %10 : vector<8x32xf32> to vector<8x32xbf16>
    %c0_8 = arith.constant 0 : index
    %c0_9 = arith.constant 0 : index
    %12 = vector.load %arg3[%c0_8, %c0_9] : memref<32x32xbf16, #tpu.memory_space<vmem>>, vector<32x32xbf16>
    %cst_10 = arith.constant dense<0.000000e+00> : vector<8x32xf32>
    %13 = tpu.matmul %11, %12, %cst_10 {dimension_numbers = #tpu.dot_dimension_numbers<[1], [0], [0], [1], [0, 0, 1, 1], [], []>} : vector<8x32xbf16>, vector<32x32xbf16>, vector<8x32xf32> -> vector<8x32xf32>
    %14 = vector.broadcast %3 : vector<1x32xf32> to vector<8x32xf32>
    %15 = arith.addf %13, %14 : vector<8x32xf32>
    %cst_11 = arith.constant 0.000000e+00 : f32
    %16 = vector.broadcast %cst_11 : f32 to vector<8x32xf32>
    %17 = arith.maximumf %15, %16 : vector<8x32xf32>
    %18 = arith.truncf %17 : vector<8x32xf32> to vector<8x32xbf16>
    %c0_12 = arith.constant 0 : index
    %c0_13 = arith.constant 0 : index
    %19 = vector.load %arg4[%c0_12, %c0_13] : memref<32x3xbf16, #tpu.memory_space<vmem>>, vector<32x3xbf16>
    %cst_14 = arith.constant dense<0.000000e+00> : vector<8x3xf32>
    %20 = tpu.matmul %18, %19, %cst_14 {dimension_numbers = #tpu.dot_dimension_numbers<[1], [0], [0], [1], [0, 0, 1, 1], [], []>} : vector<8x32xbf16>, vector<32x3xbf16>, vector<8x3xf32> -> vector<8x3xf32>
    %21 = vector.broadcast %4 : vector<1x3xf32> to vector<8x3xf32>
    %22 = arith.addf %20, %21 : vector<8x3xf32>
    %c0_15 = arith.constant 0 : index
    %c0_16 = arith.constant 0 : index
    %23 = vector.load %arg6[%c0_15, %c0_16] : memref<8x3xf32, #tpu.memory_space<vmem>>, vector<8x3xf32>
    tpu.vector_store %arg6[%c0_15, %c0_16], %22 {strides = array<i32>} : memref<8x3xf32, #tpu.memory_space<vmem>>, vector<8x3xf32>,
    return
  }
  func.func @transform_0(%arg0: i32) -> (i32, i32) {
    %c0_i32 = arith.constant 0 : i32
    %c0_i32_0 = arith.constant 0 : i32
    return %arg0, %c0_i32 : i32, i32
  }
  func.func @transform_1(%arg0: i32) -> (i32, i32) {
    %c0_i32 = arith.constant 0 : i32
    %c0_i32_0 = arith.constant 0 : i32
    %c0_i32_1 = arith.constant 0 : i32
    return %c0_i32, %c0_i32_0 : i32, i32
  }
  func.func @transform_2(%arg0: i32) -> (i32, i32) {
    %c0_i32 = arith.constant 0 : i32
    %c0_i32_0 = arith.constant 0 : i32
    %c0_i32_1 = arith.constant 0 : i32
    return %c0_i32, %c0_i32_0 : i32, i32
  }
  func.func @transform_3(%arg0: i32) -> (i32, i32) {
    %c0_i32 = arith.constant 0 : i32
    %c0_i32_0 = arith.constant 0 : i32
    %c0_i32_1 = arith.constant 0 : i32
    return %c0_i32, %c0_i32_0 : i32, i32
  }
  func.func @transform_4(%arg0: i32) -> (i32, i32) {
    %c0_i32 = arith.constant 0 : i32
    %c0_i32_0 = arith.constant 0 : i32
    %c0_i32_1 = arith.constant 0 : i32
    return %c0_i32, %c0_i32_0 : i32, i32
  }
  func.func @transform_5(%arg0: i32) -> (i32, i32) {
    %c0_i32 = arith.constant 0 : i32
    %c0_i32_0 = arith.constant 0 : i32
    return %arg0, %c0_i32 : i32, i32
  }
}

</mosaic_0001>

<bundles_post_ra>
// kernel: tpu_custom_call.1
= control target key start
LH: loop header
LB: loop body
LE: loop exit
PB: predicated region body
PF: predicated region fallthrough
CT: control target
= control target key end

     0   :  { %10 = vsyncpa [#allocation3], 0  ;;  %s345_s0 = inlined_call_operand.hbm [shape: f32[8,16], index: 0, kind: input, shape index: {}]   ;;  %s346_s1 = inlined_call_operand.hbm [shape: bf16[16,32], index: 1, kind: input, shape index: {}]   ;;  %s347_s2 = inlined_call_operand.vmem [shape: bf16[32,32], index: 2, kind: input, shape index: {}]   ;;  %s348_s3 = inlined_call_operand.vmem [shape: bf16[32,3], index: 3, kind: input, shape index: {}]   ;;  %s349_s4 = inlined_call_operand.hbm [shape: f32[3,32], index: 4, kind: input, shape index: {}]   ;;  %s350_s5 = inlined_call_operand.vmem [shape: f32[8,3], index: 5, kind: output, shape index: {}]  }
   0x1   :  { %11 = vsyncpa [#allocation5], 0  ;;  %s27_s20 = sshll.u32 %s346_s1, 4  ;;  %s286_s21 = smov [#allocation4]   ;;  %s28_s20 = int_to_ptr.hbm [resolvable:$true] %s27_s20 }
   0x2   :  { %s29_s22 = sshll.u32 %s286_s21, 4  ;;  %s17_s25 = sshll.u32 %s345_s0, 4  ;;  %s30_s22 = int_to_ptr.vmem [resolvable:$true] %s29_s22  ;;  %s18_s25 = int_to_ptr.hbm [resolvable:$true] %s17_s25 }
   0x3   :  { %s287_s26 = smov 64   ;;  %s288_s27 = smov 4  }
   0x4   :  { %35 = dma.hbm_to_vmem [thread:$0]  %s28_s20, 128, %s30_s22, [#allocation5], %s287_s26, %s287_s26, %s288_s27  }
   0x5   :  { %s289_s28 = smov [#allocation2]   ;;  %s45_s7 = sshll.u32 %s349_s4, 4  ;;  %s46_s7 = int_to_ptr.hbm [resolvable:$true] %s45_s7 }
   0x6   :  { %s19_s29 = sshll.u32 %s289_s28, 4  ;;  %s290_s1 = smov [#allocation6]   ;;  %s20_s29 = int_to_ptr.vmem [resolvable:$true] %s19_s29 }
   0x7   :  { %22 = dma.hbm_to_vmem [thread:$0]  %s18_s25, 128, %s20_s29, [#allocation3]  }
   0x8   :  { %s47_s8 = sshll.u32 %s290_s1, 4  ;;  %s48_s8 = int_to_ptr.vmem [resolvable:$true] %s47_s8 }
   0x9   :  { %50 = dma.hbm_to_vmem [thread:$0]  %s46_s7, 64, %s48_s8, [#allocation5]  }
   0xa   :  { %282 = dma.done.wait [#allocation3], 128  }
   0xb   :  { %283 = vsyncadd [#allocation3], 4294967168 }
   0xc   :  { %284 = dma.done.wait [#allocation5], 192  }
   0xd   :  { %285 = vsyncadd [#allocation5], 4294967104  ;;  %v197_v0 = vld [vmem:[#allocation4] sm:$0xff]  ;;  %v64_v1 = vld [vmem:[#allocation2] sm:$0xff]  ;;  %vm78_vm0 = vcmask 130048   ;;  %vm114_vm1 = vcmask 261120  }
   0xe   :  { %v65_v2 = vpack.c.bf16 %v64_v1, %v64_v1  ;;  %89 = vmatpush.bf16.msra.mxu0 %v197_v0  ;;  %v199_v3 = vld [vmem:[%s347_s2 + $0x8] sm:$0xff]  ;;  %v198_v4 = vld [vmem:[%s347_s2] sm:$0xff]  ;;  %v207_v5 = vld [vmem:[#allocation6] ss:$0 sm:$0xff]  ;;  %vm166_vm2 = vcmask 23552  }
   0xf   :  { %124 = vmatpush.bf16.msra.mxu1 %v199_v3  ;;  %v201_v11 = vld [vmem:[%s348_s3 + $0x8] sm:$0xff]  ;;  %v200_v12 = vld [vmem:[%s348_s3] sm:$0xff]  ;;  %v208_v13 = vld [vmem:[#allocation6 + $0x1] ss:$0 sm:$0xff] }
  0x10   :  { %159 = vmatpush.bf16.msra.mxu2 %v201_v11  ;;  %v209_v19 = vld [vmem:[#allocation6 + $0x2] ss:$0 sm:$0xff] }
  0x11   :  { %178 = vmatmul.msk.bf16.vlgmr.msra.gmra.mxu0 %vm78_vm0, %v65_v2 }
  0x13   :  { %125 = vmatpush.bf16.msra.mxu1 %v198_v4 }
  0x14   :  { %160 = vmatpush.bf16.msra.mxu2 %v200_v12 }
  0x8e   :  { %v91_v6 = vpop.f32.mrf.mxu0 }
  0x8f   :  { %v92_v7 = vadd.f32 %v207_v5, %v91_v6 }
  0x91   :  { %v95_v8 = vmax.f32 %v92_v7, 0.0 }
  0x93   :  { %v96_v9 = vpack.c.bf16 %v95_v8, %v95_v8 }
  0x95   :  { %187 = vmatmul.msk.bf16.vlgmr.msra.gmra.mxu1 %vm114_vm1, %v96_v9 }
  0x96   :  { %v93_v10 = vpop.f32.mrf.mxu0 }
 0x112   :  { %v127_v14 = vpop.f32.mrf.mxu1 }
 0x113   :  { %v128_v15 = vadd.f32 %v208_v13, %v127_v14 }
 0x115   :  { %v131_v16 = vmax.f32 %v128_v15, 0.0 }
 0x117   :  { %v132_v17 = vpack.c.bf16 %v131_v16, %v131_v16 }
 0x119   :  { %196 = vmatmul.msk.bf16.vlgmr.msra.gmra.mxu2 %vm114_vm1, %v132_v17 }
 0x11a   :  { %v129_v18 = vpop.f32.mrf.mxu1 }
 0x19c   :  { %v162_v20 = vpop.f32.mrf.mxu2 }
 0x19d   :  { %v163_v21 = vadd.f32 %v209_v19, %v162_v20 }
 0x19f   :  { %167 = vst.msk [vmem:[%s350_s5] sm:$0xff] %vm166_vm2, %v163_v21 }
 0x1a4   :  { %v164_v22 = vpop.f32.mrf.mxu2 }
 0x1a5   :  { %172 = vsyncpa [#allocation3], 1 }
 0x1a6   :  { %173 = vsyncpa [#allocation5], 1 }

</bundles_post_ra>
